<compile_context>
chip_gen: v6e
topology: v6e:2x2x1
jax: 0.10.0
libtpu: 0.0.40
codegen_flags: <defaults>
</compile_context>

<pallas_src>
import jax
import jax.numpy as jnp
from jax.experimental import pallas as pl
from jax.experimental.pallas import tpu as pltpu

EPS = 1e-6  # matches style_extraction eps
_MAX_BATCH_PACK = 8


# --------------------------------------------------------------------------
# VMEM budget derivation (per chip generation)
# --------------------------------------------------------------------------
def _derive_vmem_budget():
    """Returns (working_set_budget_bytes, vmem_limit_bytes) for this chip."""
    cap = None
    try:
        cap = int(pltpu.get_tpu_info().vmem_capacity_bytes)
    except Exception:
        cap = None
    if not cap or cap <= 0:
        cap = 64 << 20  # conservative default: assume v7x-sized physical VMEM
    # ~60% of physical VMEM as the scoped limit (headroom for compiler temps),
    # hard-capped at 96 MiB.  v5e/v6e (128 MiB phys) -> ~77 MiB, v7x -> ~38 MiB.
    vmem_limit = min((cap * 3) // 5, 96 << 20)
    # Our explicit working set (double-buffered blocks + f32 slabs) must stay
    # under ~80% of the scoped limit.
    ws_budget = (vmem_limit * 4) // 5
    return ws_budget, int(vmem_limit)


# --------------------------------------------------------------------------
# Fused single-pass kernel (small/medium images): stats + scale/bias + apply.
# Fully vectorized over the packed batch dimension.
# --------------------------------------------------------------------------
def _make_fused_kernel(hw_true):
    inv_n = 1.0 / float(hw_true)
    inv_nm1 = 1.0 / float(max(hw_true - 1, 1))  # guard HW == 1

    def fused_kernel(x_ref, pmu_ref, psig_ref, out_ref):
        # x_ref: (bt, C, HWp); pmu/psig: (C, P) resident (constant index_map).
        pmu = pmu_ref[...]
        psig = psig_ref[...]
        proto_ratio = (pmu / psig)[None, :, :]                    # (1, C, P)

        x = x_ref[...].astype(jnp.float32)                        # (bt, C, HWp)
        # style_extraction via sum / sum-of-squares (no (C,HW) diff temporary).
        # Zero-padded lanes contribute nothing; divide by the true HW.
        s = jnp.sum(x, axis=2, keepdims=True)                     # (bt, C, 1)
        sq = jnp.sum(x * x, axis=2, keepdims=True)                # (bt, C, 1)
        mu = s * inv_n
        # TODO(synk): f32 sumsq-sum*mu can lose precision for huge HW with
        # strongly non-zero-mean activations; switch to a shifted accumulation
        # if real features drift beyond tolerance.
        var = (sq - s * mu) * inv_nm1                             # unbiased (torch.var)
        sig = jnp.sqrt(var + EPS)                                 # (bt, C, 1)

        # abs_distance, mean over channels -> (bt, 1, P)
        dist = jnp.mean(jnp.abs(mu / sig - proto_ratio), axis=1, keepdims=True)
        # alpha = softmax(1 / (1 + distance)) over prototypes.
        a = 1.0 / (1.0 + dist)
        a = a - jnp.max(a, axis=2, keepdims=True)
        e = jnp.exp(a)
        alpha = e / jnp.sum(e, axis=2, keepdims=True)             # (bt, 1, P)
        mixed_mu = jnp.sum(pmu[None] * alpha, axis=2, keepdims=True)   # (bt, C, 1)
        mixed_sig = jnp.sum(psig[None] * alpha, axis=2, keepdims=True)  # (bt, C, 1)

        # Fold rectification into per-channel scale/bias (C divides, not C*HW).
        scale = mixed_sig / sig
        bias = mixed_mu - mu * scale
        out_ref[...] = (x * scale + bias).astype(out_ref.dtype)

    return fused_kernel


def _fused_call(x, pmu_t, psig_t, bt, hw_true, vmem_limit):
    B, C, HWp = x.shape
    P = pmu_t.shape[1]
    return pl.pallas_call(
        _make_fused_kernel(hw_true),
        out_shape=jax.ShapeDtypeStruct((B, C, HWp), x.dtype),
        grid_spec=pltpu.PrefetchScalarGridSpec(
            num_scalar_prefetch=0,
            grid=(B // bt,),
            in_specs=[
                pl.BlockSpec((bt, C, HWp), lambda i: (i, 0, 0)),
                pl.BlockSpec((C, P), lambda i: (0, 0)),
                pl.BlockSpec((C, P), lambda i: (0, 0)),
            ],
            out_specs=pl.BlockSpec((bt, C, HWp), lambda i: (i, 0, 0)),
        ),
        compiler_params=pltpu.CompilerParams(
            dimension_semantics=("parallel",),
            vmem_limit_bytes=int(vmem_limit)),
    )(x, pmu_t, psig_t)


# --------------------------------------------------------------------------
# Two-pass path (large images): pass 1 = stats over HW tiles -> scale/bias,
# pass 2 = elementwise apply out = x * scale + bias over (B, HW/tile).
# --------------------------------------------------------------------------
def _make_stats_kernel(hw_true):
    inv_n = 1.0 / float(hw_true)
    inv_nm1 = 1.0 / float(max(hw_true - 1, 1))

    def stats_kernel(x_ref, pmu_ref, psig_ref, scale_ref, bias_ref,
                     sum_sc, sumsq_sc):
        t = pl.program_id(1)

        @pl.when(t == 0)
        def _():
            sum_sc[...] = jnp.zeros_like(sum_sc)
            sumsq_sc[...] = jnp.zeros_like(sumsq_sc)

        x = x_ref[0].astype(jnp.float32)                          # (C, tile)
        sum_sc[...] += jnp.sum(x, axis=1, keepdims=True)
        sumsq_sc[...] += jnp.sum(x * x, axis=1, keepdims=True)

        @pl.when(t == pl.num_programs(1) - 1)
        def _():
            s = sum_sc[...]
            mu = s * inv_n                                        # (C, 1)
            var = (sumsq_sc[...] - s * mu) * inv_nm1              # unbiased
            sig = jnp.sqrt(var + EPS)                             # (C, 1)
            pmu = pmu_ref[...]
            psig = psig_ref[...]
            dist = jnp.mean(jnp.abs(mu / sig - pmu / psig),
                            axis=0, keepdims=True)                # (1, P)
            a = 1.0 / (1.0 + dist)
            a = a - jnp.max(a, axis=1, keepdims=True)
            e = jnp.exp(a)
            alpha = e / jnp.sum(e, axis=1, keepdims=True)         # (1, P)
            mixed_mu = jnp.sum(pmu * alpha, axis=1, keepdims=True)
            mixed_sig = jnp.sum(psig * alpha, axis=1, keepdims=True)
            scale = mixed_sig / sig
            scale_ref[0] = scale
            bias_ref[0] = mixed_mu - mu * scale

    return stats_kernel


def _apply_kernel(x_ref, scale_ref, bias_ref, out_ref):
    x = x_ref[0].astype(jnp.float32)                              # (C, tile)
    out_ref[0] = (x * scale_ref[0] + bias_ref[0]).astype(out_ref.dtype)


def _stats_call(x, pmu_t, psig_t, tile, hw_true, vmem_limit):
    B, C, HWp = x.shape
    P = pmu_t.shape[1]
    # TODO(synk): for B==1 on v7x the single 'parallel' axis leaves one
    # TensorCore idle during this pass; a split-HW partial-sum variant would
    # recover ~2x there.
    return pl.pallas_call(
        _make_stats_kernel(hw_true),
        out_shape=(jax.ShapeDtypeStruct((B, C, 1), jnp.float32),
                   jax.ShapeDtypeStruct((B, C, 1), jnp.float32)),
        grid_spec=pltpu.PrefetchScalarGridSpec(
            num_scalar_prefetch=0,
            grid=(B, HWp // tile),
            in_specs=[
                pl.BlockSpec((1, C, tile), lambda b, t: (b, 0, t)),
                pl.BlockSpec((C, P), lambda b, t: (0, 0)),
                pl.BlockSpec((C, P), lambda b, t: (0, 0)),
            ],
            out_specs=(
                pl.BlockSpec((1, C, 1), lambda b, t: (b, 0, 0)),
                pl.BlockSpec((1, C, 1), lambda b, t: (b, 0, 0)),
            ),
            scratch_shapes=[pltpu.VMEM((C, 1), jnp.float32),
                            pltpu.VMEM((C, 1), jnp.float32)],
        ),
        compiler_params=pltpu.CompilerParams(
            dimension_semantics=("parallel", "arbitrary"),
            vmem_limit_bytes=int(vmem_limit)),
    )(x, pmu_t, psig_t)


def _apply_call(x, scale, bias, tile, vmem_limit):
    B, C, HWp = x.shape
    return pl.pallas_call(
        _apply_kernel,
        out_shape=jax.ShapeDtypeStruct((B, C, HWp), x.dtype),
        grid_spec=pltpu.PrefetchScalarGridSpec(
            num_scalar_prefetch=0,
            grid=(B, HWp // tile),
            in_specs=[
                pl.BlockSpec((1, C, tile), lambda b, t: (b, 0, t)),
                pl.BlockSpec((1, C, 1), lambda b, t: (b, 0, 0)),
                pl.BlockSpec((1, C, 1), lambda b, t: (b, 0, 0)),
            ],
            out_specs=pl.BlockSpec((1, C, tile), lambda b, t: (b, 0, t)),
        ),
        compiler_params=pltpu.CompilerParams(
            dimension_semantics=("parallel", "parallel"),
            vmem_limit_bytes=int(vmem_limit)),
    )(x, scale, bias)


def _pick_hw_tile(hw_pad, c, per_elem_bytes, ws_budget):
    """Largest multiple-of-128 divisor of hw_pad whose per-step working set fits
    the budget, aiming for >= 4 pipeline steps along hw while staying past the
    ~512-lane point where DMA efficiency plateaus.  hw_pad % 128 == 0 so a
    valid tile always exists (>= 128)."""
    max_by_vmem = max(ws_budget // (c * per_elem_bytes), 128)
    target = min(max_by_vmem, max(hw_pad // 4, 512))
    t = min((target // 128) * 128, hw_pad)
    t = max(t, 128)
    while t >= 128:
        if hw_pad % t == 0:
            return t
        t -= 128
    return 128


# --------------------------------------------------------------------------
# Wrapper
# --------------------------------------------------------------------------
def style_rectification(fea, style_mu, style_sig, *, force_two_pass=False):
    """fea: (B, C, H, W); style_mu/style_sig: (P, C). Returns (B, C, H, W)."""
    B, C, H, W = fea.shape
    HW = H * W
    x = fea.reshape(B, C, HW)

    # Lane-align the flattened spatial axis.  Zero padding is exact for the
    # sum / sum-of-squares statistics (we divide by the true HW) and the
    # padded lanes are sliced off after the kernels; it also keeps all output
    # stores lane-dense (no masked partial vst).
    HWp = ((HW + 127) // 128) * 128
    if HWp != HW:
        x = jnp.pad(x, ((0, 0), (0, 0), (0, HWp - HW)))

    # Prototypes in f32, transposed to (C, P). Tiny; their constant index_map
    # keeps them resident in VMEM across grid steps (no per-step refetch).
    pmu_t = jnp.asarray(style_mu, jnp.float32).T
    psig_t = jnp.asarray(style_sig, jnp.float32).T

    itemsize = jnp.dtype(fea.dtype).itemsize
    ws_budget, vmem_limit = _derive_vmem_budget()
    # Steady-state bytes/element: double-buffered input block + double-buffered
    # output block (fea dtype) + the f32 slab + one f32 temporary (x*x / epilogue).
    per_elem_ws = 4 * itemsize + 8
    per_image_ws = C * HWp * per_elem_ws

    if (not force_two_pass) and per_image_ws <= ws_budget:
        # Fused single pass: 1 read + 1 write of fea.  Pack batch items per
        # grid step only while keeping >= min(B, 4) grid steps so the pipeline
        # can overlap DMA and both v7x TensorCores get work.
        min_steps = min(B, 4)
        max_bt = max(1, B // min_steps)
        bt = 1
        for cand in range(min(max_bt, _MAX_BATCH_PACK), 0, -1):
            if B % cand == 0 and cand * per_image_ws <= ws_budget:
                bt = cand
                break
        out = _fused_call(x, pmu_t, psig_t, bt, HW, vmem_limit)
    else:
        # Two-pass: stats over lane-aligned HW tiles -> per-channel scale/bias,
        # then a streaming apply with both grid axes parallel.
        tile = _pick_hw_tile(HWp, C, per_elem_ws, ws_budget)
        scale, bias = _stats_call(x, pmu_t, psig_t, tile, HW, vmem_limit)
        out = _apply_call(x, scale, bias, tile, vmem_limit)

    if HWp != HW:
        out = out[:, :, :HW]
    return out.reshape(B, C, H, W)


def style_rectification_ref(fea, style_mu, style_sig):
    """Pure-JAX reference mirroring the PyTorch forward (abs, not channel_wise)."""
    B, C, H, W = fea.shape
    x = fea.reshape(B, C, H * W).astype(jnp.float32)
    mu = jnp.mean(x, axis=2)                                  # (B, C)
    var = jnp.var(x, axis=2, ddof=1)                          # unbiased, like torch
    sig = jnp.sqrt(var + EPS)
    dist = jnp.abs((mu / sig)[:, None, :] -
                   (style_mu / style_sig)[None, :, :])        # (B, P, C)
    dist = dist.mean(axis=2)                                  # (B, P)
    alpha = jax.nn.softmax(1.0 / (1.0 + dist), axis=1)        # (B, P)
    mixed_mu = alpha @ style_mu                               # (B, C)
    mixed_sig = alpha @ style_sig                             # (B, C)
    out = ((fea - mu[:, :, None, None]) / sig[:, :, None, None]
           * mixed_sig[:, :, None, None] + mixed_mu[:, :, None, None])
    return out.astype(fea.dtype)


# TODO(synk): the training-time momentum update of style_mu/style_sig (stateful
# nn.Parameter reassignment + optional dist.all_reduce) is module-state
# mutation, not part of the functional forward output, and is not implemented.
# Only dis_mode='abs' with channel_wise=False (the module defaults) is kernelized.

if __name__ == "__main__":
    key = jax.random.PRNGKey(0)
    B, C, H, W = 2, 64, 16, 16          # channel_size=64 default
    P = 2                               # num_prototype default

    k_fea, k_mu, k_fea2 = jax.random.split(key, 3)
    fea = jax.random.normal(k_fea, (B, C, H, W), dtype=jnp.float32)
    # trunc_normal_(std=0.02) ~ truncated normal * 0.02 (deterministic init)
    style_mu = 0.02 * jax.random.truncated_normal(
        k_mu, -2.0, 2.0, (P, C), dtype=jnp.float32)
    style_sig = jnp.ones((P, C), dtype=jnp.float32)

    ref = style_rectification_ref(fea, style_mu, style_sig)

    # Fused single-pass path (default routing).
    out = jax.block_until_ready(style_rectification(fea, style_mu, style_sig))
    assert out.shape == (B, C, H, W)
    assert jnp.allclose(out, ref, atol=1e-4, rtol=1e-4), (
        float(jnp.max(jnp.abs(out - ref))))

    # Force the two-pass (stats + apply) tiled path so the large-image code
    # path is also compiled and verified.
    out2 = jax.block_until_ready(
        style_rectification(fea, style_mu, style_sig, force_two_pass=True))
    assert jnp.allclose(out2, ref, atol=1e-4, rtol=1e-4), (
        float(jnp.max(jnp.abs(out2 - ref))))

    # Non-lane-aligned spatial size exercises the zero-padding path.
    H2, W2 = 10, 10
    fea2 = jax.random.normal(k_fea2, (B, C, H2, W2), dtype=jnp.float32)
    ref2 = style_rectification_ref(fea2, style_mu, style_sig)
    out3 = jax.block_until_ready(style_rectification(fea2, style_mu, style_sig))
    assert jnp.allclose(out3, ref2, atol=1e-4, rtol=1e-4), (
        float(jnp.max(jnp.abs(out3 - ref2))))

    print("KERNEL_OK")
</pallas_src>

<mosaic_0001>
module attributes {stable_mosaic.version = 11 : i64} {
  func.func @fused_kernel(%arg0: i32, %arg1: memref<1x64x256xf32, #tpu.memory_space<vmem>>, %arg2: memref<64x2xf32, #tpu.memory_space<vmem>>, %arg3: memref<64x2xf32, #tpu.memory_space<vmem>>, %arg4: memref<1x64x256xf32, #tpu.memory_space<vmem>>) attributes {dimension_semantics = [#tpu.dimension_semantics<parallel>], iteration_bounds = array<i64: 2>, scalar_prefetch = 0 : i64, scratch_operands = 0 : i64, tpu.core_type = #tpu.core_type<tc>, window_params = [{transform_indices = @transform_0, window_bounds = array<i64: 1, 64, 256>}, {pipeline_mode = #tpu.pipeline_mode<synchronous>, transform_indices = @transform_1, window_bounds = array<i64: 64, 2>}, {pipeline_mode = #tpu.pipeline_mode<synchronous>, transform_indices = @transform_2, window_bounds = array<i64: 64, 2>}, {transform_indices = @transform_3, window_bounds = array<i64: 1, 64, 256>}]} {
    %c0 = arith.constant 0 : index
    %c0_0 = arith.constant 0 : index
    %0 = vector.load %arg2[%c0, %c0_0] : memref<64x2xf32, #tpu.memory_space<vmem>>, vector<64x2xf32>
    %c0_1 = arith.constant 0 : index
    %c0_2 = arith.constant 0 : index
    %1 = vector.load %arg3[%c0_1, %c0_2] : memref<64x2xf32, #tpu.memory_space<vmem>>, vector<64x2xf32>
    %2 = arith.divf %0, %1 : vector<64x2xf32>
    %3 = vector.shape_cast %2 : vector<64x2xf32> to vector<1x64x2xf32>
    %c0_3 = arith.constant 0 : index
    %c0_4 = arith.constant 0 : index
    %c0_5 = arith.constant 0 : index
    %4 = vector.load %arg1[%c0_3, %c0_4, %c0_5] : memref<1x64x256xf32, #tpu.memory_space<vmem>>, vector<1x64x256xf32>
    %cst = arith.constant dense<0.000000e+00> : vector<1x64xf32>
    %5 = vector.multi_reduction <add>, %4, %cst [2] : vector<1x64x256xf32> to vector<1x64xf32>
    %6 = vector.shape_cast %5 : vector<1x64xf32> to vector<1x64x1xf32>
    %7 = arith.mulf %4, %4 : vector<1x64x256xf32>
    %cst_6 = arith.constant dense<0.000000e+00> : vector<1x64xf32>
    %8 = vector.multi_reduction <add>, %7, %cst_6 [2] : vector<1x64x256xf32> to vector<1x64xf32>
    %9 = vector.shape_cast %8 : vector<1x64xf32> to vector<1x64x1xf32>
    %cst_7 = arith.constant 3.906250e-03 : f32
    %10 = vector.broadcast %cst_7 : f32 to vector<1x64x1xf32>
    %11 = arith.mulf %6, %10 : vector<1x64x1xf32>
    %12 = arith.mulf %6, %11 : vector<1x64x1xf32>
    %13 = arith.subf %9, %12 : vector<1x64x1xf32>
    %cst_8 = arith.constant 0.00392156886 : f32
    %14 = vector.broadcast %cst_8 : f32 to vector<1x64x1xf32>
    %15 = arith.mulf %13, %14 : vector<1x64x1xf32>
    %cst_9 = arith.constant 9.99999997E-7 : f32
    %16 = vector.broadcast %cst_9 : f32 to vector<1x64x1xf32>
    %17 = arith.addf %15, %16 : vector<1x64x1xf32>
    %18 = math.sqrt %17 : vector<1x64x1xf32>
    %19 = arith.divf %11, %18 : vector<1x64x1xf32>
    %20 = vector.broadcast %19 : vector<1x64x1xf32> to vector<1x64x2xf32>
    %21 = arith.subf %20, %3 : vector<1x64x2xf32>
    %22 = math.absf %21 : vector<1x64x2xf32>
    %cst_10 = arith.constant dense<0.000000e+00> : vector<1x2xf32>
    %23 = vector.multi_reduction <add>, %22, %cst_10 [1] : vector<1x64x2xf32> to vector<1x2xf32>
    %24 = vector.shape_cast %23 : vector<1x2xf32> to vector<1x1x2xf32>
    %cst_11 = arith.constant 6.400000e+01 : f32
    %25 = vector.broadcast %cst_11 : f32 to vector<1x1x2xf32>
    %26 = arith.divf %24, %25 : vector<1x1x2xf32>
    %cst_12 = arith.constant 1.000000e+00 : f32
    %27 = vector.broadcast %cst_12 : f32 to vector<1x1x2xf32>
    %28 = arith.addf %27, %26 : vector<1x1x2xf32>
    %cst_13 = arith.constant 1.000000e+00 : f32
    %29 = vector.broadcast %cst_13 : f32 to vector<1x1x2xf32>
    %30 = arith.divf %29, %28 : vector<1x1x2xf32>
    %cst_14 = arith.constant dense<0xFF800000> : vector<1x1xf32>
    %31 = vector.multi_reduction <maximumf>, %30, %cst_14 [2] : vector<1x1x2xf32> to vector<1x1xf32>
    %32 = vector.shape_cast %31 : vector<1x1xf32> to vector<1x1x1xf32>
    %33 = vector.broadcast %32 : vector<1x1x1xf32> to vector<1x1x2xf32>
    %34 = arith.subf %30, %33 : vector<1x1x2xf32>
    %35 = math.exp %34 : vector<1x1x2xf32>
    %cst_15 = arith.constant dense<0.000000e+00> : vector<1x1xf32>
    %36 = vector.multi_reduction <add>, %35, %cst_15 [2] : vector<1x1x2xf32> to vector<1x1xf32>
    %37 = vector.shape_cast %36 : vector<1x1xf32> to vector<1x1x1xf32>
    %38 = vector.broadcast %37 : vector<1x1x1xf32> to vector<1x1x2xf32>
    %39 = arith.divf %35, %38 : vector<1x1x2xf32>
    %40 = vector.shape_cast %0 : vector<64x2xf32> to vector<1x64x2xf32>
    %41 = vector.broadcast %39 : vector<1x1x2xf32> to vector<1x64x2xf32>
    %42 = arith.mulf %40, %41 : vector<1x64x2xf32>
    %cst_16 = arith.constant dense<0.000000e+00> : vector<1x64xf32>
    %43 = vector.multi_reduction <add>, %42, %cst_16 [2] : vector<1x64x2xf32> to vector<1x64xf32>
    %44 = vector.shape_cast %43 : vector<1x64xf32> to vector<1x64x1xf32>
    %45 = vector.shape_cast %1 : vector<64x2xf32> to vector<1x64x2xf32>
    %46 = vector.broadcast %39 : vector<1x1x2xf32> to vector<1x64x2xf32>
    %47 = arith.mulf %45, %46 : vector<1x64x2xf32>
    %cst_17 = arith.constant dense<0.000000e+00> : vector<1x64xf32>
    %48 = vector.multi_reduction <add>, %47, %cst_17 [2] : vector<1x64x2xf32> to vector<1x64xf32>
    %49 = vector.shape_cast %48 : vector<1x64xf32> to vector<1x64x1xf32>
    %50 = arith.divf %49, %18 : vector<1x64x1xf32>
    %51 = arith.mulf %11, %50 : vector<1x64x1xf32>
    %52 = arith.subf %44, %51 : vector<1x64x1xf32>
    %53 = vector.broadcast %50 : vector<1x64x1xf32> to vector<1x64x256xf32>
    %54 = arith.mulf %4, %53 : vector<1x64x256xf32>
    %55 = vector.broadcast %52 : vector<1x64x1xf32> to vector<1x64x256xf32>
    %56 = arith.addf %54, %55 : vector<1x64x256xf32>
    %c0_18 = arith.constant 0 : index
    %c0_19 = arith.constant 0 : index
    %c0_20 = arith.constant 0 : index
    %57 = vector.load %arg4[%c0_18, %c0_19, %c0_20] : memref<1x64x256xf32, #tpu.memory_space<vmem>>, vector<1x64x256xf32>
    tpu.vector_store %arg4[%c0_18, %c0_19, %c0_20], %56 {strides = array<i32>} : memref<1x64x256xf32, #tpu.memory_space<vmem>>, vector<1x64x256xf32>,
    return
  }
  func.func @transform_0(%arg0: i32) -> (i32, i32, i32) {
    %c0_i32 = arith.constant 0 : i32
    %c0_i32_0 = arith.constant 0 : i32
    %c0_i32_1 = arith.constant 0 : i32
    return %arg0, %c0_i32, %c0_i32_0 : i32, i32, i32
  }
  func.func @transform_1(%arg0: i32) -> (i32, i32) {
    %c0_i32 = arith.constant 0 : i32
    %c0_i32_0 = arith.constant 0 : i32
    %c0_i32_1 = arith.constant 0 : i32
    return %c0_i32, %c0_i32_0 : i32, i32
  }
  func.func @transform_2(%arg0: i32) -> (i32, i32) {
    %c0_i32 = arith.constant 0 : i32
    %c0_i32_0 = arith.constant 0 : i32
    %c0_i32_1 = arith.constant 0 : i32
    return %c0_i32, %c0_i32_0 : i32, i32
  }
  func.func @transform_3(%arg0: i32) -> (i32, i32, i32) {
    %c0_i32 = arith.constant 0 : i32
    %c0_i32_0 = arith.constant 0 : i32
    %c0_i32_1 = arith.constant 0 : i32
    return %arg0, %c0_i32, %c0_i32_0 : i32, i32, i32
  }
}

</mosaic_0001>

<bundles_post_ra>
// kernel: tpu_custom_call.1
= control target key start
LH: loop header
LB: loop body
LE: loop exit
PB: predicated region body
PF: predicated region fallthrough
CT: control target
= control target key end

     0   :  { %8 = vsyncpa [#allocation3], 0  ;;  %s1481_s0 = inlined_call_operand.hbm [shape: f32[2,64,256], index: 0, kind: input, shape index: {}]   ;;  %s1482_s1 = inlined_call_operand.vmem [shape: f32[64,2], index: 1, kind: input, shape index: {}]   ;;  %s1483_s2 = inlined_call_operand.vmem [shape: f32[64,2], index: 2, kind: input, shape index: {}]   ;;  %s1484_s3 = inlined_call_operand.hbm [shape: f32[2,64,256], index: 3, kind: output, shape index: {}]  }
   0x1   :  { %10 = vsyncpa [#allocation3 + $0x1], 0 }
   0x2   :  { %11 = vsyncpa [#allocation4], 0 }
   0x3   :  { %13 = vsyncpa [#allocation4 + $0x1], 0  ;;  %s930_s12 = smov 0   ;;  %s932_s13 = smov 0  }
   0x4   :  { %s934_s14 = smov 0   ;;  %s936_s15 = smov 0  }
   0x5 LB: > { %s951_s16 = sadd.s32 4294967295, %s902_s15   ;;  %s690_s17 = sadd.s32 4294967294, %s902_s15   ;;  %s902_s15 = sphi %s936_s15, %s1526_s15   ;;  %s898_s14 = sphi %s934_s14, %s1525_s14   ;;  %s894_s13 = sphi %s932_s13, %s1524_s13   ;;  %s890_s12 = sphi %s930_s12, %s1523_s12  }
   0x6   : > { %s955_s18 = sadd.s32 1, %s902_s15   ;;  %s26_s19 = sadd.s32 1, %s898_s14 }
   0x7   : > { %s23_s20 = ssub.s32 %s902_s15, %s955_s18  ;;  %p33_p0 = scmp.ne.s32.totalorder %s898_s14, %s894_s13 }
   0x8   : > { %p24_p1 = scmp.eq.s32.totalorder %s23_s20, 0  ;;  %p34_p2 = scmp.eq.s32.totalorder %s902_s15, 0 }
   0x9   : > { %p39_p3 = scmp.ne.s32.totalorder %s894_s13, %s890_s12  ;;  %p40_p4 = scmp.eq.s32.totalorder %s951_s16, 0 }
   0xa   : > { %s967_s21 = scalar_select %p24_p1, %s898_s14, %s26_s19  }
   0xb   : > { %p969_p5 = por %p34_p2, %p33_p0  ;;  %p973_p6 = por %p40_p4, %p39_p3 }
   0xc   : > { %p105_p7 = scmp.eq.s32.totalorder %s951_s16, 1  ;;  %p111_p8 = scmp.eq.s32.totalorder %s690_s17, 1 }
   0xd   : > { %s1497_s23 = scalar_select %p973_p6, 1, 0 }
   0xe   : > { %p718_p10 = scmp.lt.s32.totalorder %s902_s15, 2  ;;  %p980_p11 = por %p105_p7, %p33_p0 }
   0xf   : > { %p984_p12 = por %p111_p8, %p39_p3  ;;  %s137_s26 = sand.u32 1, %s898_s14  }
  0x10   : > { %s1498_s24 = scalar_select %p980_p11, 1, 0 }
  0x11   : > { %s1499_s25 = scalar_select %p984_p12, 1, 0 }
  0x12   : > { %s704_s27 = sshll.u32 %s902_s15, 11  ;;  %s693_s28 = sshll.u32 %s137_s26, 7 }
  0x13   : > { %s993_s4 = scalar_lea.hbm %s1481_s0, %s704_s27  ;;  %s141_s5 = scalar_lea.vmem [#allocation2], %s693_s28 }
  0x14   : > { %s148_s6 = sshll.u32 %s141_s5, 4  ;;  %p997_p13 = pnand %p718_p10, %p969_p5  ;;  %s1001_s6 = int_to_ptr.vmem [resolvable:$true] %s148_s6 }
  0x15   : > { %s1003_s8 = scalar_lea.sflag [#allocation3], %s137_s26  ;;  %s810_s9 = scalar_lea.hbm %s993_s4, 2048 }
  0x16   : > { %p811_p0 = scmp.ne.s32.totalorder %s993_s4, %s810_s9  ;;  %p812_p1 = pneg %p997_p13 }
  0x17   : > { %s815_s17 = scalar_lea.hbm %s1481_s0, 4096  ;;  %p816_p4 = scmp.lt.s32.totalorder %s993_s4, %s1481_s0 }
  0x18   : > { %p813_p2 = pnand %p812_p1, %p811_p0  ;;  %p817_p5 = scmp.lt.s32.totalorder %s815_s17, %s810_s9 }
  0x1a   : > { %p814_p3 = pneg %p813_p2  ;;  %p818_p7 = por %p817_p5, %p816_p4 }
  0x1c   : > { %p819_p8 = pnand %p818_p7, %p814_p3 }
  0x1e   : > { %822 = shalt.err (!%p819_p8)
}
  0x1f   : > { %s823_s22 = scalar_lea.vmem %s1001_s6, 2048  ;;  %s904_s26 = smov [#allocation2]  }
  0x20   : > { %p824_p10 = scmp.ne.s32.totalorder %s1001_s6, %s823_s22  ;;  %s828_s27 = sshll.u32 %s904_s26, 4  ;;  %s829_s27 = int_to_ptr.vmem [resolvable:$false] %s828_s27 }
  0x21   : > { %s830_s28 = scalar_lea.vmem %s829_s27, 4096  ;;  %p831_p2 = scmp.lt.s32.totalorder %s1001_s6, %s829_s27 }
  0x22   : > { %p826_p9 = pnand %p824_p10, %p812_p1  ;;  %p832_p12 = scmp.lt.s32.totalorder %s830_s28, %s823_s22 }
  0x24   : > { %p827_p0 = pneg %p826_p9  ;;  %p833_p11 = por %p832_p12, %p831_p2 }
  0x26   : > { %p834_p6 = pnand %p833_p11, %p827_p0 }
  0x28   : > { %837 = shalt.err (!%p834_p6)
}
  0x29   : > { %s905_s29 = smov 256   ;;  %s906_s30 = smov 16  }
  0x2a   : > { %713 = dma.hbm_to_vmem [thread:$0]  (!%p997_p13), %s993_s4, 2048, %s1001_s6, %s1003_s8, %s905_s29, %s905_s29, %s906_s30  }
  0x2b   : > { %p696_p9 = scmp.ge.s32.totalorder %s902_s15, 1  ;;  %p156_p1 = scmp.lt.s32.totalorder %s902_s15, 3 }
  0x2d   : > { %p157_p3 = pnand %p696_p9, %p156_p1 }
  0x2f   : > { %160 = sbr.rel (%p157_p3) target bundleno = 808 (0x328), region = 32 }
  0x34   : > { %s1027_s5 = sand.u32 1, %s894_s13   ;;  %p1501_p6 = scmp.ne.s32.totalorder %s1497_s23, 0 }
  0x35   : > { %s697_s9 = sshll.u32 %s1027_s5, 7  ;;  %s163_s10 = scalar_lea.sflag [#allocation3], %s1027_s5 }
  0x36   : > { %s1033_s11 = scalar_lea.vmem [#allocation2], %s697_s9 }
  0x37   : > { %881 = dma.done.wait (%p1501_p6), %s163_s10, 2048  }
  0x38   : > { %883 = vsyncadd (%p1501_p6), %s163_s10, 4294965248  ;;  %v1040_v0 = vld [vmem:[%s1033_s11 + $0x20] sm:$0xff]  ;;  %v1043_v1 = vld [vmem:[%s1033_s11 + $0x28] sm:$0xff]  ;;  %s1397_s23 = scalar_lea.vmem [#allocation5], %s697_s9  ;;  %s705_s9 = sshll.u32 %s951_s16, 11 }
  0x39   : > { %v1046_v2 = vld [vmem:[%s1033_s11] sm:$0xff]  ;;  %v243_v3 = vadd.f32 %v1043_v1, %v1040_v0  ;;  %v1051_v4 = vld [vmem:[%s1033_s11 + $0x8] sm:$0xff]  ;;  %v1054_v5 = vld [vmem:[%s1033_s11 + $0x30] sm:$0xff]  ;;  %v265_v17 = vmul.f32 %v1040_v0, %v1040_v0  ;;  %v266_v18 = vmul.f32 %v1043_v1, %v1043_v1  ;;  %s617_s4 = sshll.u32 %s1397_s23, 4  ;;  %s1432_s7 = scalar_lea.hbm %s1484_s3, %s705_s9  ;;  %s1434_s4 = int_to_ptr.vmem [resolvable:$true] %s617_s4 }
  0x3a   : > { %v1057_v6 = vld [vmem:[%s1033_s11 + $0x38] sm:$0xff]  ;;  %v237_v7 = vadd.f32 %v1051_v4, %v1046_v2  ;;  %v1062_v8 = vld [vmem:[%s1033_s11 + $0x10] sm:$0xff]  ;;  %v1076_v14 = vld [vmem:[%s1033_s11 + $0x40] sm:$0xff]  ;;  %v261_v20 = vmul.f32 %v1046_v2, %v1046_v2  ;;  %v262_v21 = vmul.f32 %v1051_v4, %v1051_v4  ;;  %v267_v23 = vmul.f32 %v1054_v5, %v1054_v5  ;;  %s604_s8 = scalar_lea.sflag [#allocation4], %s1027_s5  ;;  %s838_s17 = scalar_lea.vmem %s1434_s4, 2048 }
  0x3b   : > { %v1065_v9 = vld [vmem:[%s1033_s11 + $0x18] sm:$0xff]  ;;  %244 = vadd.xlane.f32.xlu1 %v243_v3  ;;  %v246_v10 = vadd.f32 %v1057_v6, %v1054_v5  ;;  %v263_v11 = vmul.f32 %v1062_v8, %v1062_v8  ;;  %1502 = vst [vmem:[#allocation8_spill] sm:$0xff] %v1076_v14  ;;  %v1079_v15 = vld [vmem:[%s1033_s11 + $0x48] sm:$0xff]  ;;  %v283_v22 = vadd.f32 %v266_v18, %v265_v17  ;;  %v1096_v26 = vld [vmem:[%s1033_s11 + $0x50] sm:$0xff]  ;;  %p839_p11 = scmp.ne.s32.totalorder %s1434_s4, %s838_s17  ;;  %p1520_p12 = scmp.ne.s32.totalorder %s1498_s24, 0 }
  0x3c   : > { %v264_v12 = vmul.f32 %v1065_v9, %v1065_v9  ;;  %238 = vadd.xlane.f32.xlu0 %v237_v7  ;;  %v240_v13 = vadd.f32 %v1065_v9, %v1062_v8  ;;  %1503 = vst [vmem:[#allocation9_spill] sm:$0xff] %v1079_v15  ;;  %v249_v19 = vadd.f32 %v1079_v15, %v1076_v14  ;;  %v1099_v27 = vld [vmem:[%s1033_s11 + $0x58] sm:$0xff]  ;;  %v1108_v32 = vld [vmem:[%s1033_s11 + $0x60] sm:$0xff]  ;;  %v1111_v33 = vld [vmem:[%s1033_s11 + $0x68] sm:$0xff]  ;;  %s907_s19 = smov [#allocation5]  }
  0x3d   : > { %v268_v24 = vmul.f32 %v1057_v6, %v1057_v6  ;;  %v277_v25 = vadd.f32 %v262_v21, %v261_v20  ;;  %1504 = vst [vmem:[#allocation10_spill] sm:$0xff] %v1099_v27  ;;  %v269_v29 = vmul.f32 %v1076_v14, %v1076_v14  ;;  %v270_v30 = vmul.f32 %v1079_v15, %v1079_v15  ;;  %v1120_v38 = vld [vmem:[%s1033_s11 + $0x70] sm:$0xff]  ;;  %v1123_v39 = vld [vmem:[%s1033_s11 + $0x78] sm:$0xff]  ;;  %p840_p13 = pnand %p839_p11, %p1520_p12  ;;  %s842_s20 = sshll.u32 %s907_s19, 4  ;;  %s843_s20 = int_to_ptr.vmem [resolvable:$false] %s842_s20 }
  0x3e   : > { %v280_v16 = vadd.f32 %v264_v12, %v263_v11  ;;  %v252_v31 = vadd.f32 %v1099_v27, %v1096_v26  ;;  %1505 = vst [vmem:[#allocation11_spill] sm:$0xff] %v1108_v32  ;;  %1506 = vst [vmem:[#allocation12_spill] sm:$0xff] %v1111_v33  ;;  %v271_v35 = vmul.f32 %v1096_v26, %v1096_v26  ;;  %s844_s22 = scalar_lea.vmem %s843_s20, 4096  ;;  %p845_p5 = scmp.lt.s32.totalorder %s1434_s4, %s843_s20 }
  0x3f   : > { %247 = vadd.xlane.f32.xlu1 %v246_v10  ;;  %v286_v28 = vadd.f32 %v268_v24, %v267_v23  ;;  %v289_v34 = vadd.f32 %v270_v30, %v269_v29  ;;  %v272_v36 = vmul.f32 %v1099_v27, %v1099_v27  ;;  %v255_v37 = vadd.f32 %v1111_v33, %v1108_v32  ;;  %p841_p4 = pneg %p840_p13  ;;  %p846_p7 = scmp.lt.s32.totalorder %s844_s22, %s838_s17 }
  0x40   : > { %241 = vadd.xlane.f32.xlu0 %v240_v13  ;;  %1507 = vst [vmem:[#allocation13_spill] sm:$0xff] %v1120_v38  ;;  %1508 = vst [vmem:[#allocation14_spill] sm:$0xff] %v1123_v39  ;;  %v275_v41 = vmul.f32 %v1120_v38, %v1120_v38  ;;  %v276_v42 = vmul.f32 %v1123_v39, %v1123_v39  ;;  %v258_v43 = vadd.f32 %v1123_v39, %v1120_v38 }
  0x41   : > { %v292_v40 = vadd.f32 %v272_v36, %v271_v35  ;;  %v273_v44 = vmul.f32 %v1108_v32, %v1108_v32  ;;  %v274_v45 = vmul.f32 %v1111_v33, %v1111_v33  ;;  %p847_p8 = por %p846_p7, %p845_p5 }
  0x42   : > { %v298_v46 = vadd.f32 %v276_v42, %v275_v41 }
  0x43   : > { %281 = vadd.xlane.f32.xlu1 %v280_v16  ;;  %v295_v47 = vadd.f32 %v274_v45, %v273_v44  ;;  %p848_p10 = pnand %p847_p8, %p841_p4 }
  0x44   : > { %250 = vadd.xlane.f32.xlu0 %v249_v19 }
  0x47   : > { %284 = vadd.xlane.f32.xlu1 %v283_v22 }
  0x48   : > { %278 = vadd.xlane.f32.xlu0 %v277_v25 }
  0x4b   : > { %287 = vadd.xlane.f32.xlu1 %v286_v28 }
  0x4c   : > { %253 = vadd.xlane.f32.xlu0 %v252_v31 }
  0x4f   : > { %290 = vadd.xlane.f32.xlu1 %v289_v34 }
  0x50   : > { %256 = vadd.xlane.f32.xlu0 %v255_v37 }
  0x53   : > { %293 = vadd.xlane.f32.xlu1 %v292_v40 }
  0x54   : > { %259 = vadd.xlane.f32.xlu0 %v258_v43 }
  0x57   : > { %299 = vadd.xlane.f32.xlu1 %v298_v46 }
  0x58   : > { %296 = vadd.xlane.f32.xlu0 %v295_v47 }
  0xc4   : > { %v245_v48 = vpop.xlane.xlu1 %244 }
  0xc5   : > { %v239_v49 = vpop.xlane.xlu0 %238  ;;  %v1137_v53 = vmul.f32 0.00390625, %v245_v48 }
  0xc6   : > { %v1139_v54 = vmul.f32 0.00390625, %v239_v49 }
  0xc7   : > { %v311_v59 = vmul.f32 %v1137_v53, %v245_v48 }
  0xc8   : > { %v248_v50 = vpop.xlane.xlu1 %247  ;;  %v309_v61 = vmul.f32 %v1139_v54, %v239_v49 }
  0xc9   : > { %v242_v51 = vpop.xlane.xlu0 %241  ;;  %v1143_v60 = vmul.f32 0.00390625, %v248_v50 }
  0xca   : > { %v1135_v52 = vmul.f32 0.00390625, %v242_v51 }
  0xcb   : > { %v312_v12 = vmul.f32 %v1143_v60, %v248_v50  ;;  %v1171_v50 = vld [vmem:[%s1483_s2 + $0x8] sm:$0xff] }
  0xcc   : > { %v310_v55 = vmul.f32 %v1135_v52, %v242_v51  ;;  %v282_v56 = vpop.xlane.xlu1 %281 }
  0xcd   : > { %v251_v57 = vpop.xlane.xlu0 %250 }
  0xce   : > { %v318_v58 = vsub.f32 %v282_v56, %v310_v55  ;;  %v1147_v13 = vmul.f32 0.00390625, %v251_v57 }
  0xd0   : > { %v326_v62 = vmul.f32 0.003921569, %v318_v58  ;;  %v285_v63 = vpop.xlane.xlu1 %284  ;;  %v313_v22 = vmul.f32 %v1147_v13, %v251_v57 }
  0xd1   : > { %v319_v3 = vsub.f32 %v285_v63, %v311_v59  ;;  %v279_v7 = vpop.xlane.xlu0 %278  ;;  %v1178_v59 = vld [vmem:[%s1483_s2] sm:$0xff] }
  0xd2   : > { %v334_v10 = vadd.f32 1e-06, %v326_v62  ;;  %v317_v11 = vsub.f32 %v279_v7, %v309_v61 }
  0xd3   : > { %v327_v16 = vmul.f32 0.003921569, %v319_v3 }
  0xd4   : > { %756 = vrsqrt.f32 %v334_v10  ;;  %v288_v17 = vpop.xlane.xlu1 %287  ;;  %v325_v19 = vmul.f32 0.003921569, %v317_v11  ;;  %vm350_vm0 = vcmp.eq.f32.partialorder %v334_v10, inf  ;;  %v353_v56 = vand.u32 2147483648, %v334_v10  ;;  %v1185_v11 = vld [vmem:[%s1483_s2 + $0x10] sm:$0xff] }
  0xd5   : > { %v335_v18 = vadd.f32 1e-06, %v327_v16  ;;  %v320_v20 = vsub.f32 %v288_v17, %v312_v12  ;;  %v254_v21 = vpop.xlane.xlu0 %253  ;;  %vm352_vm1 = vcmp.eq.f32.partialorder %v334_v10, 0.0 }
  0xd6   : > { %v1150_v23 = vadd.f32 1e-06, %v325_v19  ;;  %v1152_v25 = vmul.f32 0.00390625, %v254_v21 }
  0xd7   : > { %758 = vrsqrt.f32 %v335_v18  ;;  %v328_v24 = vmul.f32 0.003921569, %v320_v20  ;;  %vm357_vm2 = vcmp.eq.f32.partialorder %v335_v18, inf  ;;  %v360_v12 = vand.u32 2147483648, %v335_v18 }
  0xd8   : > { %v291_v28 = vpop.xlane.xlu1 %290  ;;  %760 = vrsqrt.f32 %v1150_v23  ;;  %v314_v35 = vmul.f32 %v1152_v25, %v254_v21  ;;  %vm359_vm3 = vcmp.eq.f32.partialorder %v335_v18, 0.0  ;;  %vm343_vm4 = vcmp.eq.f32.partialorder %v1150_v23, inf }
  0xd9   : > { %v321_v29 = vsub.f32 %v291_v28, %v313_v22  ;;  %v257_v30 = vpop.xlane.xlu0 %256  ;;  %v1155_v31 = vadd.f32 1e-06, %v328_v24  ;;  %v346_v24 = vand.u32 2147483648, %v1150_v23  ;;  %vm345_vm5 = vcmp.eq.f32.partialorder %v1150_v23, 0.0 }
  0xda   : > { %v1158_v36 = vmul.f32 0.00390625, %v257_v30 }
  0xdb   : > { %v329_v34 = vmul.f32 0.003921569, %v321_v29  ;;  %762 = vrsqrt.f32 %v1155_v31  ;;  %vm364_vm6 = vcmp.eq.f32.partialorder %v1155_v31, inf  ;;  %vm366_vm7 = vcmp.eq.f32.partialorder %v1155_v31, 0.0 }
  0xdc   : > { %1509 = vst [vmem:[#allocation15_spill] sm:$0xff] %v1158_v36  ;;  %v294_v37 = vpop.xlane.xlu1 %293  ;;  %v315_v44 = vmul.f32 %v1158_v36, %v257_v30 }
  0xdd   : > { %v260_v40 = vpop.xlane.xlu0 %259  ;;  %v1161_v41 = vadd.f32 1e-06, %v329_v34  ;;  %v322_v42 = vsub.f32 %v294_v37, %v314_v35  ;;  %v1209_v35 = vld [vmem:[%s1483_s2 + $0x20] sm:$0xff] }
  0xde   : > { %v1163_v43 = vmul.f32 0.00390625, %v260_v40 }
  0xdf   : > { %764 = vrsqrt.f32 %v1161_v41  ;;  %v330_v47 = vmul.f32 0.003921569, %v322_v42  ;;  %vm371_vm8 = vcmp.eq.f32.partialorder %v1161_v41, inf  ;;  %vm373_vm9 = vcmp.eq.f32.partialorder %v1161_v41, 0.0 }
  0xe0   : > { %1510 = vst [vmem:[#allocation16_spill] sm:$0xff] %v1163_v43  ;;  %v300_v45 = vpop.xlane.xlu1 %299  ;;  %v316_v48 = vmul.f32 %v1163_v43, %v260_v40  ;;  %766 = vrcp.f32 %v1171_v50 }
  0xe1   : > { %v757_v46 = vpop.eup %756  ;;  %v297_v49 = vpop.xlane.xlu0 %296  ;;  %v1173_v57 = vadd.f32 1e-06, %v330_v47 }
  0xe2   : > { %v349_v51 = vmul.f32 %v757_v46, %v334_v10  ;;  %v323_v55 = vsub.f32 %v297_v49, %v315_v44  ;;  %v324_v58 = vsub.f32 %v300_v45, %v316_v48  ;;  %v374_v45 = vand.u32 2147483648, %v1161_v41 }
  0xe3   : > { %768 = vrsqrt.f32 %v1173_v57  ;;  %vm378_vm10 = vcmp.eq.f32.partialorder %v1173_v57, inf  ;;  %vm380_vm11 = vcmp.eq.f32.partialorder %v1173_v57, 0.0 }
  0xe4   : > { %v759_v61 = vpop.eup %758  ;;  %v351_v62 = vsel %vm350_vm0, %v334_v10, %v349_v51  ;;  %v331_v63 = vmul.f32 0.003921569, %v323_v55  ;;  %v332_v16 = vmul.f32 0.003921569, %v324_v58  ;;  %770 = vrcp.f32 %v1178_v59 }
  0xe5   : > { %v354_v3 = vsel %vm352_vm1, %v353_v56, %v351_v62  ;;  %v356_v7 = vmul.f32 %v759_v61, %v335_v18  ;;  %v761_v17 = vpop.eup %760  ;;  %v1231_v56 = vld [vmem:[%s1483_s2 + $0x30] sm:$0xff]  ;;  %v381_v58 = vand.u32 2147483648, %v1173_v57  ;;  %v1241_v61 = vld [vmem:[%s1482_s1] sm:$0xff]  ;;  %v1246_v62 = vld [vmem:[%s1482_s1 + $0x8] sm:$0xff]  ;;  %vm429_vm0 = vcmask 15360  }
  0xe6   : > { %772 = vrcp.f32 %v354_v3  ;;  %v1188_v19 = vadd.f32 1e-06, %v331_v63  ;;  %v342_v21 = vmul.f32 %v761_v17, %v1150_v23  ;;  %v1191_v22 = vadd.f32 1e-06, %v332_v16 }
  0xe7   : > { %v358_v10 = vsel %vm357_vm2, %v335_v18, %v356_v7  ;;  %774 = vrcp.f32 %v1185_v11  ;;  %v1202_v18 = vld [vmem:[%s1483_s2 + $0x18] sm:$0xff]  ;;  %v1253_v7 = vld [vmem:[%s1482_s1 + $0x10] sm:$0xff] }
  0xe8   : > { %v361_v20 = vsel %vm359_vm3, %v360_v12, %v358_v10  ;;  %v763_v28 = vpop.eup %762  ;;  %v344_v29 = vsel %vm343_vm4, %v1150_v23, %v342_v21  ;;  %v367_v23 = vand.u32 2147483648, %v1155_v31  ;;  %v1258_v12 = vld [vmem:[%s1483_s2 + $0x38] sm:$0xff]  ;;  %vm385_vm12 = vcmp.eq.f32.partialorder %v1188_v19, inf }
  0xe9   : > { %776 = vrcp.f32 %v361_v20  ;;  %v347_v30 = vsel %vm345_vm5, %v346_v24, %v344_v29  ;;  %v363_v34 = vmul.f32 %v763_v28, %v1155_v31  ;;  %vm392_vm13 = vcmp.eq.f32.partialorder %v1191_v22, inf }
  0xea   : > { %778 = vrsqrt.f32 %v1191_v22  ;;  %vm387_vm14 = vcmp.eq.f32.partialorder %v1188_v19, 0.0  ;;  %vm394_vm15 = vcmp.eq.f32.partialorder %v1191_v22, 0.0 }
  0xeb   : > { %780 = vrsqrt.f32 %v1188_v19  ;;  %v365_v40 = vsel %vm364_vm6, %v1155_v31, %v363_v34  ;;  %v1225_v31 = vld [vmem:[%s1483_s2 + $0x28] sm:$0xff]  ;;  %v395_v34 = vand.u32 2147483648, %v1191_v22 }
  0xec   : > { %782 = vrcp.f32 %v347_v30  ;;  %v765_v37 = vpop.eup %764  ;;  %v368_v42 = vsel %vm366_vm7, %v367_v23, %v365_v40 }
  0xed   : > { %784 = vrcp.f32 %v1202_v18  ;;  %v370_v44 = vmul.f32 %v765_v37, %v1161_v41  ;;  %v767_v47 = vpop.eup %766 }
  0xee   : > { %786 = vrcp.f32 %v1209_v35  ;;  %v208_v21 = vmul.f32 %v767_v47, %v1246_v62 }
  0xef   : > { %788 = vrcp.f32 %v368_v42  ;;  %v372_v46 = vsel %vm371_vm8, %v1161_v41, %v370_v44  ;;  %v388_v44 = vand.u32 2147483648, %v1188_v19 }
  0xf0   : > { %v375_v48 = vsel %vm373_vm9, %v374_v45, %v372_v46  ;;  %v769_v49 = vpop.eup %768  ;;  %v1285_v45 = vld [vmem:[%s1482_s1 + $0x18] sm:$0xff] }
  0xf1   : > { %790 = vrcp.f32 %v375_v48  ;;  %v771_v51 = vpop.eup %770  ;;  %v377_v55 = vmul.f32 %v769_v49, %v1173_v57 }
  0xf2   : > { %792 = vrcp.f32 %v1225_v31 }
  0xf3   : > { %v1234_v41 = vpop.eup %772  ;;  %v379_v3 = vsel %vm378_vm10, %v1173_v57, %v377_v55  ;;  %794 = vrcp.f32 %v1231_v56  ;;  %v206_v57 = vmul.f32 %v771_v51, %v1241_v61 }
  0xf4   : > { %v775_v63 = vpop.eup %774  ;;  %v382_v17 = vsel %vm380_vm11, %v381_v58, %v379_v3  ;;  %v400_v20 = vmul.f32 %v1234_v41, %v1135_v52  ;;  %v1297_v58 = vld [vmem:[%s1482_s1 + $0x20] sm:$0xff] }
  0xf5   : > { %796 = vrcp.f32 %v382_v17  ;;  %v210_v29 = vmul.f32 %v775_v63, %v1253_v7 }
  0xf6   : > { %v1260_v16 = vpop.eup %776  ;;  %798 = vrcp.f32 %v1258_v12  ;;  %v414_v51 = vsub.f32 %v400_v20, %v208_v21 }
  0xf7   : > { %v779_v10 = vpop.eup %778  ;;  %v402_v47 = vmul.f32 %v1260_v16, %v1137_v53 }
  0xf8   : > { %v781_v24 = vpop.eup %780  ;;  %v391_v28 = vmul.f32 %v779_v10, %v1191_v22  ;;  %v422_v21 = vand.u32 2147483647, %v414_v51  ;;  %v1320_v51 = vld [vmem:[%s1482_s1 + $0x38] sm:$0xff] }
  0xf9   : > { %v1271_v30 = vpop.eup %782  ;;  %v384_v23 = vmul.f32 %v781_v24, %v1188_v19  ;;  %v415_v20 = vsub.f32 %v402_v47, %v210_v29 }
  0xfa   : > { %v785_v37 = vpop.eup %784  ;;  %v398_v40 = vmul.f32 %v1271_v30, %v1139_v54  ;;  %v393_v42 = vsel %vm392_vm13, %v1191_v22, %v391_v28  ;;  %v431_v29 = vsel %vm429_vm0, %v422_v21, 0.0 }
  0xfb   : > { %v787_v46 = vpop.eup %786  ;;  %v396_v48 = vsel %vm394_vm15, %v395_v34, %v393_v42  ;;  %v386_v49 = vsel %vm385_vm12, %v1188_v19, %v384_v23  ;;  %v212_v3 = vmul.f32 %v785_v37, %v1285_v45  ;;  %v1308_v34 = vld [vmem:[%s1482_s1 + $0x28] sm:$0xff] }
  0xfc   : > { %v1292_v55 = vpop.eup %788  ;;  %800 = vrcp.f32 %v396_v48  ;;  %v389_v22 = vsel %vm387_vm14, %v388_v44, %v386_v49  ;;  %v413_v63 = vsub.f32 %v398_v40, %v206_v57  ;;  %v214_v19 = vmul.f32 %v787_v46, %v1297_v58 }
  0xfd   : > { %802 = vrcp.f32 %v389_v22  ;;  %v404_v17 = vmul.f32 %v1292_v55, %v1143_v60  ;;  %v423_v46 = vand.u32 2147483647, %v415_v20 }
  0xfe   : > { %v421_v10 = vand.u32 2147483647, %v413_v63  ;;  %v1302_v24 = vpop.eup %790 }
  0xff   : > { %v793_v28 = vpop.eup %792  ;;  %v406_v57 = vmul.f32 %v1302_v24, %v1147_v13  ;;  %v416_v23 = vsub.f32 %v404_v17, %v212_v3  ;;  %v1327_v3 = vld [vmem:[%s1482_s1 + $0x30] sm:$0xff] }
 0x100   : > { %v430_v37 = vsel %vm429_vm0, %v421_v10, 0.0  ;;  %v795_v40 = vpop.eup %794  ;;  %v216_v42 = vmul.f32 %v793_v28, %v1308_v34 }
 0x101   : > { %v417_v44 = vsub.f32 %v406_v57, %v214_v19  ;;  %v432_v48 = vadd.f32 %v431_v29, %v430_v37  ;;  %v424_v63 = vand.u32 2147483647, %v416_v23  ;;  %v433_v19 = vsel %vm429_vm0, %v423_v46, 0.0 }
 0x102   : > { %v1315_v47 = vpop.eup %796  ;;  %v218_v57 = vmul.f32 %v795_v40, %v1327_v3 }
 0x103   : > { %v799_v49 = vpop.eup %798  ;;  %v408_v22 = vmul.f32 %v1315_v47, %v1152_v25  ;;  %v425_v10 = vand.u32 2147483647, %v417_v44  ;;  %v434_v21 = vadd.f32 %v433_v19, %v432_v48  ;;  %v435_v29 = vsel %vm429_vm0, %v424_v63, 0.0 }
 0x104   : > { %v220_v20 = vmul.f32 %v799_v49, %v1320_v51 }
 0x105   : > { %v418_v17 = vsub.f32 %v408_v22, %v216_v42  ;;  %v437_v44 = vsel %vm429_vm0, %v425_v10, 0.0  ;;  %v436_v49 = vadd.f32 %v435_v29, %v434_v21 }
 0x107   : > { %v426_v37 = vand.u32 2147483647, %v418_v17  ;;  %v438_v19 = vadd.f32 %v437_v44, %v436_v49 }
 0x109   : > { %v1331_v28 = vpop.eup %800  ;;  %v439_v22 = vsel %vm429_vm0, %v426_v37, 0.0 }
 0x10a   : > { %v1335_v23 = vpop.eup %802  ;;  %v412_v33 = vmul.f32 %v1331_v28, %v1163_v43  ;;  %v440_v32 = vadd.f32 %v439_v22, %v438_v19 }
 0x10b   : > { %v410_v42 = vmul.f32 %v1335_v23, %v1158_v36 }
 0x10c   : > { %v420_v46 = vsub.f32 %v412_v33, %v220_v20 }
 0x10d   : > { %v419_v48 = vsub.f32 %v410_v42, %v218_v57 }
 0x10e   : > { %v428_v17 = vand.u32 2147483647, %v420_v46 }
 0x10f   : > { %v427_v40 = vand.u32 2147483647, %v419_v48 }
 0x110   : > { %v443_v38 = vsel %vm429_vm0, %v428_v17, 0.0 }
 0x111   : > { %v441_v63 = vsel %vm429_vm0, %v427_v40, 0.0 }
 0x112   : > { %v442_v39 = vadd.f32 %v441_v63, %v440_v32 }
 0x114   : > { %v444_v43 = vadd.f32 %v443_v38, %v442_v39 }
 0x116   : > { %v445_v15 = vrot.slane %v444_v43, 4 }
 0x118   : > { %v446_v14 = vadd.f32 %v445_v15, %v444_v43 }
 0x11a   : > { %v447_v36 = vrot.slane %v446_v14, 2 }
 0x11c   : > { %v448_v27 = vadd.f32 %v447_v36, %v446_v14 }
 0x11e   : > { %v449_v10 = vrot.slane %v448_v27, 1 }
 0x120   : > { %v450_v33 = vadd.f32 %v449_v10, %v448_v27 }
 0x122   : > { %v452_v20 = vmul.f32 0.015625, %v450_v33 }
 0x124   : > { %v453_v21 = vadd.f32 1.0, %v452_v20 }
 0x126   : > { %804 = vrcp.f32 %v453_v21 }
 0x133   : > { %v805_v57 = vpop.eup %804 }
 0x134   : > { %v456_v37 = vsel %vm429_vm0, %v805_v57, -inf }
 0x135   : > { %457 = vmax.xlane.f32.xlu0 %v456_v37 }
 0x1be   : > { %v458_v29 = vpop.xlane.xlu0 %457 }
 0x1bf   : > { %v459_v42 = vsub.f32 %v805_v57, %v458_v29 }
 0x1c1   : > { %v460_v44 = vmul.f32 1.442695, %v459_v42 }
 0x1c3   : > { %806 = vpow2.f32 %v460_v44 }
 0x1d0   : > { %v807_v32 = vpop.eup %806 }
 0x1d1   : > { %v462_v38 = vsel %vm429_vm0, %v807_v32, 0.0 }
 0x1d2   : > { %463 = vadd.xlane.f32.xlu1 %v462_v38 }
 0x25b   : > { %v464_v15 = vpop.xlane.xlu1 %463 }
 0x25c   : > { %808 = vrcp.f32 %v464_v15 }
 0x269   : > { %v809_v14 = vpop.eup %808 }
 0x26a   : > { %v466_v39 = vmul.f32 %v809_v14, %v807_v32 }
 0x26c   : > { %v500_v27 = vmul.f32 %v466_v39, %v1171_v50  ;;  %v499_v36 = vmul.f32 %v466_v39, %v1178_v59  ;;  %v502_v49 = vmul.f32 %v466_v39, %v1202_v18  ;;  %v501_v48 = vmul.f32 %v466_v39, %v1185_v11 }
 0x26d   : > { %v504_v40 = vmul.f32 %v466_v39, %v1225_v31  ;;  %v503_v50 = vmul.f32 %v466_v39, %v1209_v35  ;;  %v506_v18 = vmul.f32 %v466_v39, %v1258_v12  ;;  %v505_v11 = vmul.f32 %v466_v39, %v1231_v56 }
 0x26e   : > { %v510_v43 = vsel %vm429_vm0, %v500_v27, 0.0  ;;  %v507_v46 = vsel %vm429_vm0, %v499_v36, 0.0  ;;  %v516_v22 = vsel %vm429_vm0, %v502_v49, 0.0  ;;  %v513_v19 = vsel %vm429_vm0, %v501_v48, 0.0 }
 0x26f   : > { %511 = vadd.xlane.f32.xlu1 %v510_v43  ;;  %508 = vadd.xlane.f32.xlu0 %v507_v46  ;;  %v522_v59 = vsel %vm429_vm0, %v504_v40, 0.0  ;;  %v519_v17 = vsel %vm429_vm0, %v503_v50, 0.0  ;;  %v528_v63 = vsel %vm429_vm0, %v506_v18, 0.0  ;;  %v525_v10 = vsel %vm429_vm0, %v505_v11, 0.0 }
 0x270   : > { %v468_v31 = vmul.f32 %v466_v39, %v1246_v62  ;;  %v467_v35 = vmul.f32 %v466_v39, %v1241_v61  ;;  %v470_v12 = vmul.f32 %v466_v39, %v1285_v45  ;;  %v469_v56 = vmul.f32 %v466_v39, %v1253_v7 }
 0x271   : > { %v472_v62 = vmul.f32 %v466_v39, %v1308_v34  ;;  %v471_v61 = vmul.f32 %v466_v39, %v1297_v58  ;;  %v474_v45 = vmul.f32 %v466_v39, %v1320_v51  ;;  %v473_v7 = vmul.f32 %v466_v39, %v1327_v3 }
 0x272   : > { %v478_v33 = vsel %vm429_vm0, %v468_v31, 0.0  ;;  %v475_v20 = vsel %vm429_vm0, %v467_v35, 0.0  ;;  %v484_v21 = vsel %vm429_vm0, %v470_v12, 0.0  ;;  %v481_v57 = vsel %vm429_vm0, %v469_v56, 0.0  ;;  %v1511_v56 = vld [vmem:[#allocation10_spill] sm:$0xff] }
 0x273   : > { %517 = vadd.xlane.f32.xlu1 %v516_v22  ;;  %514 = vadd.xlane.f32.xlu0 %v513_v19  ;;  %v490_v37 = vsel %vm429_vm0, %v472_v62, 0.0  ;;  %v487_v29 = vsel %vm429_vm0, %v471_v61, 0.0  ;;  %v496_v42 = vsel %vm429_vm0, %v474_v45, 0.0  ;;  %v493_v44 = vsel %vm429_vm0, %v473_v7, 0.0 }
 0x277   : > { %523 = vadd.xlane.f32.xlu1 %v522_v59  ;;  %520 = vadd.xlane.f32.xlu0 %v519_v17 }
 0x27b   : > { %529 = vadd.xlane.f32.xlu1 %v528_v63  ;;  %526 = vadd.xlane.f32.xlu0 %v525_v10 }
 0x27f   : > { %479 = vadd.xlane.f32.xlu1 %v478_v33  ;;  %476 = vadd.xlane.f32.xlu0 %v475_v20 }
 0x283   : > { %485 = vadd.xlane.f32.xlu1 %v484_v21  ;;  %482 = vadd.xlane.f32.xlu0 %v481_v57 }
 0x287   : > { %491 = vadd.xlane.f32.xlu1 %v490_v37  ;;  %488 = vadd.xlane.f32.xlu0 %v487_v29  ;;  %v1515_v29 = vld [vmem:[#allocation15_spill] sm:$0xff] }
 0x28b   : > { %497 = vadd.xlane.f32.xlu1 %v496_v42  ;;  %494 = vadd.xlane.f32.xlu0 %v493_v44 }
 0x2f8   : > { %v512_v34 = vpop.xlane.xlu1 %511  ;;  %v509_v58 = vpop.xlane.xlu0 %508 }
 0x2f9   : > { %v532_v27 = vmul.f32 %v1234_v41, %v512_v34  ;;  %v531_v51 = vmul.f32 %v1271_v30, %v509_v58  ;;  %v1516_v58 = vld [vmem:[#allocation13_spill] sm:$0xff] }
 0x2fb   : > { %v540_v46 = vmul.f32 %v532_v27, %v1135_v52  ;;  %v539_v49 = vmul.f32 %v531_v51, %v1139_v54  ;;  %v557_v48 = vmul.f32 %v532_v27, %v1062_v8  ;;  %v558_v22 = vmul.f32 %v532_v27, %v1065_v9 }
 0x2fc   : > { %v518_v32 = vpop.xlane.xlu1 %517  ;;  %v515_v38 = vpop.xlane.xlu0 %514  ;;  %v555_v41 = vmul.f32 %v531_v51, %v1046_v2  ;;  %v556_v30 = vmul.f32 %v531_v51, %v1051_v4 }
 0x2fd   : > { %v534_v39 = vmul.f32 %v1292_v55, %v518_v32  ;;  %v533_v43 = vmul.f32 %v1260_v16, %v515_v38  ;;  %v1517_v38 = vld [vmem:[#allocation14_spill] sm:$0xff] }
 0x2ff   : > { %v542_v52 = vmul.f32 %v534_v39, %v1143_v60  ;;  %v541_v54 = vmul.f32 %v533_v43, %v1137_v53  ;;  %v561_v11 = vmul.f32 %v534_v39, %v1054_v5  ;;  %v562_v63 = vmul.f32 %v534_v39, %v1057_v6  ;;  %v1519_v39 = vld [vmem:[#allocation12_spill] sm:$0xff] }
 0x300   : > { %v524_v15 = vpop.xlane.xlu1 %523  ;;  %v521_v14 = vpop.xlane.xlu0 %520  ;;  %v559_v53 = vmul.f32 %v533_v43, %v1040_v0  ;;  %v560_v5 = vmul.f32 %v533_v43, %v1043_v1 }
 0x301   : > { %v536_v55 = vmul.f32 %v1315_v47, %v524_v15  ;;  %v535_v16 = vmul.f32 %v1302_v24, %v521_v14 }
 0x303   : > { %v544_v47 = vmul.f32 %v536_v55, %v1152_v25  ;;  %v543_v31 = vmul.f32 %v535_v16, %v1147_v13  ;;  %v565_v0 = vmul.f32 %v536_v55, %v1096_v26  ;;  %v566_v21 = vmul.f32 %v536_v55, %v1511_v56  ;;  %v1512_v25 = vld [vmem:[#allocation8_spill] sm:$0xff] }
 0x304   : > { %v530_v36 = vpop.xlane.xlu1 %529  ;;  %v527_v3 = vpop.xlane.xlu0 %526  ;;  %v563_v13 = vmul.f32 %v535_v16, %v1512_v25  ;;  %v1514_v26 = vld [vmem:[#allocation16_spill] sm:$0xff] }
 0x305   : > { %v538_v60 = vmul.f32 %v1331_v28, %v530_v36  ;;  %v537_v24 = vmul.f32 %v1335_v23, %v527_v3  ;;  %v1513_v23 = vld [vmem:[#allocation9_spill] sm:$0xff]  ;;  %v1518_v36 = vld [vmem:[#allocation11_spill] sm:$0xff] }
 0x306   : > { %v564_v62 = vmul.f32 %v535_v16, %v1513_v23 }
 0x307   : > { %v546_v37 = vmul.f32 %v538_v60, %v1514_v26  ;;  %v545_v45 = vmul.f32 %v537_v24, %v1515_v29  ;;  %v569_v32 = vmul.f32 %v538_v60, %v1516_v58  ;;  %v570_v15 = vmul.f32 %v538_v60, %v1517_v38 }
 0x308   : > { %v480_v19 = vpop.xlane.xlu1 %479  ;;  %v477_v40 = vpop.xlane.xlu0 %476  ;;  %v567_v3 = vmul.f32 %v537_v24, %v1518_v36  ;;  %v568_v43 = vmul.f32 %v537_v24, %v1519_v39 }
 0x309   : > { %v548_v50 = vsub.f32 %v480_v19, %v540_v46  ;;  %v547_v59 = vsub.f32 %v477_v40, %v539_v49 }
 0x30b   : > { %v573_v8 = vadd.f32 %v557_v48, %v548_v50  ;;  %v574_v17 = vadd.f32 %v558_v22, %v548_v50  ;;  %v571_v9 = vadd.f32 %v555_v41, %v547_v59  ;;  %v572_v18 = vadd.f32 %v556_v30, %v547_v59 }
 0x30c   : > { %v486_v2 = vpop.xlane.xlu1 %485  ;;  %v483_v10 = vpop.xlane.xlu0 %482 }
 0x30d   : > { %589 = vst [vmem:[%s1397_s23 + $0x10] sm:$0xff] %v573_v8  ;;  %590 = vst [vmem:[%s1397_s23 + $0x18] sm:$0xff] %v574_v17  ;;  %v550_v4 = vsub.f32 %v486_v2, %v542_v52  ;;  %v549_v6 = vsub.f32 %v483_v10, %v541_v54 }
 0x30e   : > { %587 = vst [vmem:[%s1397_s23] sm:$0xff] %v571_v9  ;;  %588 = vst [vmem:[%s1397_s23 + $0x8] sm:$0xff] %v572_v18 }
 0x30f   : > { %v577_v35 = vadd.f32 %v561_v11, %v550_v4  ;;  %v578_v33 = vadd.f32 %v562_v63, %v550_v4  ;;  %v575_v20 = vadd.f32 %v559_v53, %v549_v6  ;;  %v576_v12 = vadd.f32 %v560_v5, %v549_v6 }
 0x310   : > { %v492_v1 = vpop.xlane.xlu1 %491  ;;  %v489_v57 = vpop.xlane.xlu0 %488 }
 0x311   : > { %593 = vst [vmem:[%s1397_s23 + $0x30] sm:$0xff] %v577_v35  ;;  %594 = vst [vmem:[%s1397_s23 + $0x38] sm:$0xff] %v578_v33  ;;  %v552_v28 = vsub.f32 %v492_v1, %v544_v47  ;;  %v551_v61 = vsub.f32 %v489_v57, %v543_v31 }
 0x312   : > { %591 = vst [vmem:[%s1397_s23 + $0x20] sm:$0xff] %v575_v20  ;;  %592 = vst [vmem:[%s1397_s23 + $0x28] sm:$0xff] %v576_v12 }
 0x313   : > { %v581_v7 = vadd.f32 %v565_v0, %v552_v28  ;;  %v582_v42 = vadd.f32 %v566_v21, %v552_v28  ;;  %v579_v44 = vadd.f32 %v563_v13, %v551_v61  ;;  %v580_v34 = vadd.f32 %v564_v62, %v551_v61 }
 0x314   : > { %v498_v14 = vpop.xlane.xlu1 %497  ;;  %v495_v27 = vpop.xlane.xlu0 %494 }
 0x315   : > { %597 = vst [vmem:[%s1397_s23 + $0x50] sm:$0xff] %v581_v7  ;;  %598 = vst [vmem:[%s1397_s23 + $0x58] sm:$0xff] %v582_v42  ;;  %v554_v51 = vsub.f32 %v498_v14, %v546_v37  ;;  %v553_v46 = vsub.f32 %v495_v27, %v545_v45 }
 0x316   : > { %595 = vst [vmem:[%s1397_s23 + $0x40] sm:$0xff] %v579_v44  ;;  %596 = vst [vmem:[%s1397_s23 + $0x48] sm:$0xff] %v580_v34 }
 0x317   : > { %v585_v49 = vadd.f32 %v569_v32, %v554_v51  ;;  %v586_v48 = vadd.f32 %v570_v15, %v554_v51  ;;  %v583_v22 = vadd.f32 %v567_v3, %v553_v46  ;;  %v584_v19 = vadd.f32 %v568_v43, %v553_v46 }
 0x319   : > { %601 = vst [vmem:[%s1397_s23 + $0x70] sm:$0xff] %v585_v49  ;;  %602 = vst [vmem:[%s1397_s23 + $0x78] sm:$0xff] %v586_v48 }
 0x31a   : > { %599 = vst [vmem:[%s1397_s23 + $0x60] sm:$0xff] %v583_v22  ;;  %600 = vst [vmem:[%s1397_s23 + $0x68] sm:$0xff] %v584_v19 }
 0x31b   : > { %851 = shalt.err (!%p848_p10)
}
 0x31c   : > { %s852_s26 = scalar_lea.hbm %s1432_s7, 2048  ;;  %s856_s29 = scalar_lea.hbm %s1484_s3, 4096 }
 0x31d   : > { %p853_p0 = scmp.ne.s32.totalorder %s1432_s7, %s852_s26  ;;  %p857_p1 = scmp.lt.s32.totalorder %s1432_s7, %s1484_s3 }
 0x31e   : > { %p858_p3 = scmp.lt.s32.totalorder %s856_s29, %s852_s26 }
 0x31f   : > { %p854_p2 = pnand %p853_p0, %p1520_p12 }
 0x320   : > { %p859_p6 = por %p858_p3, %p857_p1 }
 0x321   : > { %p855_p9 = pneg %p854_p2 }
 0x323   : > { %p860_p11 = pnand %p859_p6, %p855_p9 }
 0x325   : > { %863 = shalt.err (!%p860_p11)
}
 0x326   : > { %s908_s11 = smov 256   ;;  %s909_s23 = smov 16  }
 0x327   : > { %708 = dma.vmem_to_hbm [thread:$0]  (%p1520_p12), %s1434_s4, 2048, %s1432_s7, %s604_s8, %s908_s11, %s908_s11, %s909_s23  }
 0x328 PF: > { %s632_s9 = sand.u32 1, %s890_s12   ;;  %p1521_p13 = scmp.ne.s32.totalorder %s1499_s25, 0 }
 0x329   : > { %p1522_p4 = scmp.ge.s32.totalorder %s902_s15, 2  ;;  %s633_s16 = scalar_lea.sflag [#allocation4], %s632_s9 }
 0x32b   : > { %p715_p5 = pnand %p1522_p4, %p1521_p13 }
 0x32d   : > { %p716_p7 = pneg %p715_p5 }
 0x32f   : > { %885 = dma.done.wait (%p716_p7), %s633_s16, 2048  }
 0x330   : > { %887 = vsyncadd (%p716_p7), %s633_s16, 4294965248  ;;  %p16_p8 = scmp.ge.s32.totalorder %s955_s18, 4   ;;  %s1523_s12 = smov %s894_s13 }
 0x331   : > { %s1524_s13 = smov %s898_s14  ;;  %s1525_s14 = smov %s967_s21 }
 0x332   : > { %s1526_s15 = smov %s955_s18  ;;  %18 = sbr.rel (!%p16_p8) target bundleno = 5 (0x5), region = 77 }
 0x337   :  { %638 = vsyncpa [#allocation3], 1 }
 0x338   :  { %640 = vsyncpa [#allocation3 + $0x1], 1 }
 0x339   :  { %641 = vsyncpa [#allocation4], 1 }
 0x33a   :  { %643 = vsyncpa [#allocation4 + $0x1], 1 }

</bundles_post_ra>
